<compile_context>
chip_gen: v6e
topology: v6e:2x2x1
jax: 0.10.0
libtpu: 0.0.40
codegen_flags: <defaults>
</compile_context>

<pallas_src>
import functools

import jax
import jax.numpy as jnp
from jax.experimental import pallas as pl
from jax.experimental.pallas import tpu as pltpu


_LANE_CHUNK = 512  # lanes per in-register slab: (8, 512) f32 = 4 vregs per intermediate


def _round_up(x, m):
    return ((x + m - 1) // m) * m


def _keypoint_mse_kernel(kp_ref, grid_ref, pred_ref, out_ref, *, neg_inv_two_sigma_sq):
    """One grid step = (C_TILE, HW_TILE) block of flattened heatmap channels.

    kp_ref   : VMEM f32[C_TILE, 2]      keypoint (u, v) per channel
    grid_ref : VMEM f32[2, HW_TILE]     pixel (u, v) coordinates for this lane tile
    pred_ref : VMEM  [C_TILE, HW_TILE]  predicted heatmaps (native dtype)
    out_ref  : VMEM f32[8, 128]         per-tile partial sum of squared error
    """
    c_tile, hw_tile = pred_ref.shape

    acc = jnp.zeros((8, 128), jnp.float32)
    c0 = 0
    while c0 < hw_tile:                       # static Python loop over lane chunks
        chunk = min(_LANE_CHUNK, hw_tile - c0)
        # Hoist the sublane broadcast of pixel coordinates out of the row-group loop.
        gu = jnp.broadcast_to(grid_ref[0:1, c0:c0 + chunk], (8, chunk))
        gv = jnp.broadcast_to(grid_ref[1:2, c0:c0 + chunk], (8, chunk))
        for r0 in range(0, c_tile, 8):        # static loop over 8-row groups
            u0 = kp_ref[r0:r0 + 8, 0:1]       # (8, 1)
            v0 = kp_ref[r0:r0 + 8, 1:2]       # (8, 1)
            du = gu - u0
            dv = gv - v0
            gt = jnp.exp((du * du + dv * dv) * neg_inv_two_sigma_sq)
            diff = pred_ref[r0:r0 + 8, c0:c0 + chunk].astype(jnp.float32) - gt
            sq = diff * diff
            # Fold the slab to a single (8, 128) vreg with 128-aligned VPU adds.
            part = sq[:, 0:128]
            for l0 in range(128, chunk, 128):
                part = part + sq[:, l0:l0 + 128]
            acc = acc + part
        c0 += chunk
    out_ref[...] = acc


def _choose_tiling(bk, hw, itemsize):
    """Pick (c_tile, bk_pad, num_c, hw_tile, hw_pad, num_hw) targeting ~1 MiB pred blocks."""
    target = 1 << 20

    hw_pad = _round_up(hw, 128)
    bk8 = _round_up(bk, 8)

    # Channel tile: multiple of 8, <= 256, <= number of channels.
    c_tile = target // max(1, hw_pad * itemsize)
    c_tile = max(8, min(256, (c_tile // 8) * 8, bk8))

    # Pixel tile: multiple of 128, sized so the pred block is ~1 MiB.
    hw_tile = target // max(1, c_tile * itemsize)
    hw_tile = max(128, min(hw_pad, (hw_tile // 128) * 128))
    hw_pad = _round_up(hw_pad, hw_tile)

    num_c = -(-bk8 // c_tile)
    num_hw = hw_pad // hw_tile

    # Guarantee >= 2 parallel grid steps when possible (feeds both v7x TensorCores).
    if num_c * num_hw == 1:
        if bk8 >= 16:
            c_tile = max(8, ((bk8 // 2) // 8) * 8)
            num_c = -(-bk8 // c_tile)
        elif hw_pad >= 256:
            hw_tile = _round_up(hw_pad // 2, 128)
            hw_pad = _round_up(hw_pad, hw_tile)
            num_hw = hw_pad // hw_tile

    # Rebalance the channel tile so channel padding is minimal.
    c_tile = _round_up(-(-bk8 // num_c), 8)
    bk_pad = c_tile * num_c
    return c_tile, bk_pad, num_c, hw_tile, hw_pad, num_hw


def keypoint_heatmap_loss(pred_heatmap, gt_keypoints, sigma=4.0):
    """pred_heatmap: (B, K, H, W); gt_keypoints: (B, K, 2) in (u, v) = (col, row) order."""
    B, K, H, W = pred_heatmap.shape
    hw = H * W
    bk = B * K

    itemsize = jnp.dtype(pred_heatmap.dtype).itemsize
    c_tile, bk_pad, num_c, hw_tile, hw_pad, num_hw = _choose_tiling(bk, hw, itemsize)

    pred_flat = pred_heatmap.reshape(bk, hw)                      # native dtype, lane-dense
    if bk_pad != bk or hw_pad != hw:
        pred_flat = jnp.pad(pred_flat, ((0, bk_pad - bk), (0, hw_pad - hw)))

    kp = gt_keypoints.reshape(bk, 2).astype(jnp.float32)
    if bk_pad != bk:
        # far-away sentinel keypoints -> gt underflows to exactly 0; padded pred is 0 -> zero contribution
        kp = jnp.concatenate(
            [kp, jnp.full((bk_pad - bk, 2), -1e6, jnp.float32)], axis=0)

    idx = jnp.arange(hw_pad, dtype=jnp.int32)
    in_range = idx < hw
    # padded lanes get a huge coordinate so gt underflows to 0 there as well
    grid_u = jnp.where(in_range, (idx % W).astype(jnp.float32), 1e6)   # column coordinate
    grid_v = jnp.where(in_range, (idx // W).astype(jnp.float32), 1e6)  # row coordinate
    grid_uv = jnp.stack([grid_u, grid_v], axis=0)                      # (2, hw_pad)

    neg_inv_two_sigma_sq = -1.0 / (2.0 * float(sigma) * float(sigma))
    kernel = functools.partial(_keypoint_mse_kernel,
                               neg_inv_two_sigma_sq=neg_inv_two_sigma_sq)

    partials = pl.pallas_call(
        kernel,
        out_shape=jax.ShapeDtypeStruct((num_c * 8, num_hw * 128), jnp.float32),
        grid=(num_c, num_hw),
        in_specs=[
            pl.BlockSpec((c_tile, 2), lambda i, j: (i, 0)),        # keypoints (tiny, resident over j)
            pl.BlockSpec((2, hw_tile), lambda i, j: (0, j)),       # pixel coordinates (tiny)
            pl.BlockSpec((c_tile, hw_tile), lambda i, j: (i, j)),  # pred block (~1 MiB)
        ],
        out_specs=pl.BlockSpec((8, 128), lambda i, j: (i, j)),     # 4 KiB lane-dense partials
        compiler_params=pltpu.CompilerParams(
            dimension_semantics=("parallel", "parallel"),
            vmem_limit_bytes=32 * 1024 * 1024,
        ),
    )(kp, grid_uv, pred_flat)

    return jnp.sum(partials) / jnp.float32(bk * hw)


def _reference_loss(pred_heatmap, gt_keypoints, sigma=4.0):
    """Pure-JAX reference mirroring the PyTorch semantics (mse_loss, mean reduction)."""
    B, K, H, W = pred_heatmap.shape
    v = jnp.arange(H, dtype=jnp.float32)[:, None]          # rows
    u = jnp.arange(W, dtype=jnp.float32)[None, :]          # cols
    kx = gt_keypoints[..., 0].astype(jnp.float32)[..., None, None]
    ky = gt_keypoints[..., 1].astype(jnp.float32)[..., None, None]
    d2 = (u[None, None] - kx) ** 2 + (v[None, None] - ky) ** 2
    gt_heatmap = jnp.exp(-d2 / (2.0 * sigma * sigma))
    return jnp.mean((pred_heatmap.astype(jnp.float32) - gt_heatmap) ** 2)


if __name__ == "__main__":
    B, K, H, W = 2, 4, 16, 16
    sigma = 4.0

    key = jax.random.PRNGKey(0)
    k_pred, k_kp = jax.random.split(key)
    pred_heatmap = jax.random.uniform(k_pred, (B, K, H, W), dtype=jnp.float32)
    # keypoints as (u, v) = (col, row) pixel coordinates inside the image
    gt_keypoints = jax.random.uniform(
        k_kp, (B, K, 2), dtype=jnp.float32, minval=0.0, maxval=float(min(H, W) - 1)
    )

    loss = keypoint_heatmap_loss(pred_heatmap, gt_keypoints, sigma=sigma)
    loss = jax.block_until_ready(loss)

    ref = _reference_loss(pred_heatmap, gt_keypoints, sigma=sigma)
    assert jnp.allclose(loss, ref, rtol=1e-5, atol=1e-6), (loss, ref)

    print("KERNEL_OK")
</pallas_src>

<mosaic_0001>
module attributes {stable_mosaic.version = 11 : i64} {
  func.func @_keypoint_mse_kernel(%arg0: i32, %arg1: i32, %arg2: memref<8x2xf32, #tpu.memory_space<vmem>>, %arg3: memref<2x128xf32, #tpu.memory_space<vmem>>, %arg4: memref<8x128xf32, #tpu.memory_space<vmem>>, %arg5: memref<8x128xf32, #tpu.memory_space<vmem>>) attributes {dimension_semantics = [#tpu.dimension_semantics<parallel>, #tpu.dimension_semantics<parallel>], iteration_bounds = array<i64: 1, 2>, scalar_prefetch = 0 : i64, scratch_operands = 0 : i64, tpu.core_type = #tpu.core_type<tc>, window_params = [{transform_indices = @transform_0, window_bounds = array<i64: 8, 2>}, {transform_indices = @transform_1, window_bounds = array<i64: 2, 128>}, {transform_indices = @transform_2, window_bounds = array<i64: 8, 128>}, {transform_indices = @transform_3, window_bounds = array<i64: 8, 128>}]} {
    %cst = arith.constant 0.000000e+00 : f32
    %0 = vector.broadcast %cst : f32 to vector<8x128xf32>
    %c0 = arith.constant 0 : index
    %c0_0 = arith.constant 0 : index
    %1 = vector.load %arg3[%c0, %c0_0] : memref<2x128xf32, #tpu.memory_space<vmem>>, vector<1x128xf32>
    %2 = vector.shape_cast %1 : vector<1x128xf32> to vector<1x128xf32>
    %3 = vector.broadcast %2 : vector<1x128xf32> to vector<8x128xf32>
    %c1 = arith.constant 1 : index
    %c0_1 = arith.constant 0 : index
    %4 = vector.load %arg3[%c1, %c0_1] : memref<2x128xf32, #tpu.memory_space<vmem>>, vector<1x128xf32>
    %5 = vector.shape_cast %4 : vector<1x128xf32> to vector<1x128xf32>
    %6 = vector.broadcast %5 : vector<1x128xf32> to vector<8x128xf32>
    %c0_2 = arith.constant 0 : index
    %c0_3 = arith.constant 0 : index
    %7 = vector.load %arg2[%c0_2, %c0_3] : memref<8x2xf32, #tpu.memory_space<vmem>>, vector<8x1xf32>
    %c0_4 = arith.constant 0 : index
    %c1_5 = arith.constant 1 : index
    %8 = vector.load %arg2[%c0_4, %c1_5] : memref<8x2xf32, #tpu.memory_space<vmem>>, vector<8x1xf32>
    %9 = vector.broadcast %7 : vector<8x1xf32> to vector<8x128xf32>
    %10 = arith.subf %3, %9 : vector<8x128xf32>
    %11 = vector.broadcast %8 : vector<8x1xf32> to vector<8x128xf32>
    %12 = arith.subf %6, %11 : vector<8x128xf32>
    %13 = arith.mulf %10, %10 : vector<8x128xf32>
    %14 = arith.mulf %12, %12 : vector<8x128xf32>
    %15 = arith.addf %13, %14 : vector<8x128xf32>
    %cst_6 = arith.constant -3.125000e-02 : f32
    %16 = vector.broadcast %cst_6 : f32 to vector<8x128xf32>
    %17 = arith.mulf %15, %16 : vector<8x128xf32>
    %18 = math.exp %17 : vector<8x128xf32>
    %c0_7 = arith.constant 0 : index
    %c0_8 = arith.constant 0 : index
    %19 = vector.load %arg4[%c0_7, %c0_8] : memref<8x128xf32, #tpu.memory_space<vmem>>, vector<8x128xf32>
    %20 = arith.subf %19, %18 : vector<8x128xf32>
    %21 = arith.mulf %20, %20 : vector<8x128xf32>
    %22 = arith.addf %0, %21 : vector<8x128xf32>
    %c0_9 = arith.constant 0 : index
    %c0_10 = arith.constant 0 : index
    %23 = vector.load %arg5[%c0_9, %c0_10] : memref<8x128xf32, #tpu.memory_space<vmem>>, vector<8x128xf32>
    tpu.vector_store %arg5[%c0_9, %c0_10], %22 {strides = array<i32>} : memref<8x128xf32, #tpu.memory_space<vmem>>, vector<8x128xf32>,
    return
  }
  func.func @transform_0(%arg0: i32, %arg1: i32) -> (i32, i32) {
    %c0_i32 = arith.constant 0 : i32
    %c0_i32_0 = arith.constant 0 : i32
    return %arg0, %c0_i32 : i32, i32
  }
  func.func @transform_1(%arg0: i32, %arg1: i32) -> (i32, i32) {
    %c0_i32 = arith.constant 0 : i32
    %c0_i32_0 = arith.constant 0 : i32
    return %c0_i32, %arg1 : i32, i32
  }
  func.func @transform_2(%arg0: i32, %arg1: i32) -> (i32, i32) {
    %c0_i32 = arith.constant 0 : i32
    return %arg0, %arg1 : i32, i32
  }
  func.func @transform_3(%arg0: i32, %arg1: i32) -> (i32, i32) {
    %c0_i32 = arith.constant 0 : i32
    return %arg0, %arg1 : i32, i32
  }
}

</mosaic_0001>

<bundles_post_ra>
// kernel: tpu_custom_call.1
= control target key start
LH: loop header
LB: loop body
LE: loop exit
PB: predicated region body
PF: predicated region fallthrough
CT: control target
= control target key end

     0   :  { %8 = vsyncpa [#allocation3], 0  ;;  %s761_s0 = inlined_call_operand.vmem [shape: f32[8,2], index: 0, kind: input, shape index: {}]   ;;  %s762_s1 = inlined_call_operand.vmem [shape: f32[2,256], index: 1, kind: input, shape index: {}]   ;;  %s763_s2 = inlined_call_operand.hbm [shape: f32[8,256], index: 2, kind: input, shape index: {}]   ;;  %s764_s3 = inlined_call_operand.hbm [shape: f32[8,256], index: 3, kind: output, shape index: {}]  }
   0x1   :  { %10 = vsyncpa [#allocation3 + $0x1], 0 }
   0x2   :  { %11 = vsyncpa [#allocation4], 0 }
   0x3   :  { %13 = vsyncpa [#allocation4 + $0x1], 0  ;;  %s615_s12 = smov 0   ;;  %s617_s13 = smov 0  }
   0x4   :  { %s619_s14 = smov 0   ;;  %s621_s15 = smov 0  }
   0x5   :  { %s623_s16 = smov 0   ;;  %s625_s17 = smov 0  }
   0x6 LB: > { %s396_s18 = sadd.s32 4294967295, %s589_s17   ;;  %s397_s19 = sadd.s32 4294967294, %s589_s17   ;;  %s589_s17 = sphi %s625_s17, %s19_s17   ;;  %s585_s16 = sphi %s623_s16, %s776_s16   ;;  %s581_s15 = sphi %s621_s15, %s775_s15   ;;  %s577_s14 = sphi %s619_s14, %s774_s14   ;;  %s573_s13 = sphi %s617_s13, %s773_s13   ;;  %s569_s12 = sphi %s615_s12, %s772_s12  }
   0x7   : > { %s28_s20 = sadd.s32 1, %s585_s16  ;;  %s92_s21 = sadd.s32 1, %s577_s14 }
   0x8   : > { %p29_p0 = scmp.ge.s32.totalorder %s28_s20, 2  ;;  %p99_p1 = scmp.ne.s32.totalorder %s577_s14, %s573_s13 }
   0x9   : > { %p100_p2 = scmp.eq.s32.totalorder %s589_s17, 0  ;;  %p105_p3 = scmp.ne.s32.totalorder %s573_s13, %s569_s12 }
   0xa   : > { %s778_s20 = smov (%p29_p0, %s28_s20), 0  ;;  %p106_p5 = scmp.eq.s32.totalorder %s396_s18, 0 }
   0xb   : > { %p656_p4 = por %p100_p2, %p99_p1  ;;  %s88_s23 = ssub.s32 %s585_s16, %s778_s20 }
   0xc   : > { %p131_p6 = scmp.eq.s32.totalorder %s396_s18, 1  ;;  %p90_p7 = scmp.eq.s32.totalorder %s88_s23, 0 }
   0xd   : > { %p662_p8 = por %p106_p5, %p105_p3  ;;  %p137_p10 = scmp.eq.s32.totalorder %s397_s19, 1 }
   0xe   : > { %p666_p9 = por %p131_p6, %p99_p1  ;;  %p425_p13 = scmp.lt.s32.totalorder %s589_s17, 2 }
   0xf   : > { %s671_s26 = scalar_select %p90_p7, %s577_s14, %s92_s21  }
  0x10   : > { %p673_p11 = por %p137_p10, %p105_p3  ;;  %s171_s28 = sand.u32 1, %s577_s14  }
  0x11   : > { %s401_s29 = sshll.u32 %s171_s28, 3  ;;  %s402_s30 = sshll.u32 %s585_s16, 7 }
  0x12   : > { %s768_s27 = scalar_select %p673_p11, 1, 0 }
  0x13   : > { %s182_s6 = scalar_lea.hbm %s763_s2, %s402_s30  ;;  %s175_s7 = scalar_lea.vmem [#allocation2], %s401_s29 }
  0x14   : > { %s184_s8 = sshll.u32 %s175_s7, 4  ;;  %p686_p0 = pnand %p425_p13, %p656_p4  ;;  %s185_s8 = int_to_ptr.vmem [resolvable:$true] %s184_s8 }
  0x15   : > { %p403_p1 = scmp.ge.s32.totalorder %s589_s17, 1  ;;  %p189_p2 = scmp.lt.s32.totalorder %s589_s17, 3 }
  0x16   : > { %s172_s10 = scalar_lea.sflag [#allocation3], %s171_s28  ;;  %p483_p3 = pneg %p686_p0 }
  0x17   : > { %s494_s11 = scalar_lea.vmem %s185_s8, 128  ;;  %s591_s18 = smov [#allocation2]  }
  0x18   : > { %p495_p5 = scmp.ne.s32.totalorder %s185_s8, %s494_s11  ;;  %s499_s19 = sshll.u32 %s591_s18, 4  ;;  %s500_s19 = int_to_ptr.vmem [resolvable:$false] %s499_s19 }
  0x19   : > { %s501_s21 = scalar_lea.vmem %s500_s19, 256  ;;  %p502_p10 = scmp.lt.s32.totalorder %s185_s8, %s500_s19 }
  0x1a   : > { %p497_p6 = pnand %p495_p5, %p483_p3  ;;  %p503_p12 = scmp.lt.s32.totalorder %s501_s21, %s494_s11 }
  0x1c   : > { %p498_p7 = pneg %p497_p6  ;;  %p504_p4 = por %p503_p12, %p502_p10 }
  0x1e   : > { %p505_p13 = pnand %p504_p4, %p498_p7 }
  0x20   : > { %508 = shalt.err (!%p505_p13)
}
  0x21   : > { %420 = dma.hbm_to_vmem [thread:$0]  (!%p686_p0), %s182_s6, 128, %s185_s8, %s172_s10  }
  0x22   : > { %p190_p11 = pnand %p403_p1, %p189_p2 }
  0x23   : > { %s701_s22 = sand.u32 (!%p190_p11), 1, %s573_s13  }
  0x24   : > { %193 = sbr.rel (%p190_p11) target bundleno = 214 (0xd6), region = 32  ;;  %s404_s23 = sshll.u32 (!%p190_p11), %s701_s22, 3 }
  0x25   : > { %s196_s28 = scalar_lea.sflag (!%p190_p11), [#allocation3], %s701_s22  ;;  %s199_s29 = scalar_lea.vmem (!%p190_p11), [#allocation2], %s404_s23 }
  0x29   : > { %560 = dma.done.wait (%p662_p8), %s196_s28, 128  }
  0x2a   : > { %562 = vsyncadd (%p662_p8), %s196_s28, 4294967168  ;;  %v592_v0 = vmov 0   ;;  %v248_v1 = vld [vmem:[%s761_s0] sm:$0xff]  ;;  %v593_v2 = vmov 1   ;;  %p234_p11 = scmp.lt.s32.totalorder %s581_s15, 1  ;;  %s410_s9 = sshll.u32 %s581_s15, 7 }
  0x2b   : > { %477 = vset.pattern.permute.xlu0 %v592_v0  ;;  %v266_v14 = vld [vmem:[%s199_s29] sm:$0xff]  ;;  %s229_s10 = scalar_lea.vmem [#allocation5], %s404_s23  ;;  %s285_s21 = scalar_lea.hbm %s764_s3, %s410_s9 }
  0x2c   : > { %251 = vperm.xlu0 %477, %v248_v1   ;;  %s235_s5 = scalar_select %p234_p11, %s581_s15, 1 }
  0x2d   : > { %s287_s11 = sshll.u32 %s229_s10, 4  ;;  %s272_s28 = scalar_lea.sflag [#allocation4], %s701_s22  ;;  %s288_s11 = int_to_ptr.vmem [resolvable:$true] %s287_s11 }
  0x2e   : > { %s406_s6 = sshll.u32 %s235_s5, 1  ;;  %s509_s30 = scalar_lea.vmem %s288_s11, 128 }
  0x2f   : > { %s237_s24 = scalar_lea.vmem %s762_s1, %s406_s6  ;;  %p510_p8 = scmp.ne.s32.totalorder %s288_s11, %s509_s30 }
  0x30   : > { %478 = vset.pattern.permute.xlu0 %v593_v2  ;;  %v407_v4 = vld [vmem:[%s237_s24] ss:$0 sm:$0xff]  ;;  %v408_v5 = vld [vmem:[%s237_s24 + $0x1] ss:$0 sm:$0xff]  ;;  %s594_s29 = smov [#allocation5]  }
  0x31   : > { %256 = vperm.xlu0 %478, %v248_v1   ;;  %p511_p12 = pnand %p510_p8, %p666_p9  ;;  %s513_s4 = sshll.u32 %s594_s29, 4  ;;  %s514_s4 = int_to_ptr.vmem [resolvable:$false] %s513_s4 }
  0x32   : > { %s515_s15 = scalar_lea.vmem %s514_s4, 256  ;;  %p516_p1 = scmp.lt.s32.totalorder %s288_s11, %s514_s4 }
  0x33   : > { %p512_p0 = pneg %p511_p12  ;;  %p517_p2 = scmp.lt.s32.totalorder %s515_s15, %s509_s30 }
  0x35   : > { %p518_p3 = por %p517_p2, %p516_p1 }
  0x37   : > { %p519_p5 = pnand %p518_p3, %p512_p0 }
  0xa7   : > { %v252_v3 = vpop.permute.xlu0 %251 }
  0xa8   : > { %v254_v6 = vsub.f32 %v407_v4, %v252_v3 }
  0xaa   : > { %v260_v9 = vmul.f32 %v254_v6, %v254_v6 }
  0xac   : > { %v257_v7 = vpop.permute.xlu0 %256 }
  0xad   : > { %v259_v8 = vsub.f32 %v408_v5, %v257_v7 }
  0xaf   : > { %v261_v10 = vmul.f32 %v259_v8, %v259_v8 }
  0xb1   : > { %v262_v11 = vadd.f32 %v261_v10, %v260_v9 }
  0xb3   : > { %v263_v12 = vmul.f32 -0.03125, %v262_v11 }
  0xb5   : > { %v264_v13 = vmul.f32 1.442695, %v263_v12 }
  0xb7   : > { %479 = vpow2.f32 %v264_v13 }
  0xc4   : > { %v480_v15 = vpop.eup %479 }
  0xc5   : > { %v267_v16 = vsub.f32 %v266_v14, %v480_v15 }
  0xc7   : > { %v268_v17 = vmul.f32 %v267_v16, %v267_v16 }
  0xc9   : > { %270 = vst [vmem:[%s229_s10] sm:$0xff] %v268_v17 }
  0xca   : > { %522 = shalt.err (!%p519_p5)
}
  0xcb   : > { %s523_s23 = scalar_lea.hbm %s285_s21, 128  ;;  %s527_s6 = scalar_lea.hbm %s764_s3, 256 }
  0xcc   : > { %p524_p6 = scmp.ne.s32.totalorder %s285_s21, %s523_s23  ;;  %p528_p4 = scmp.lt.s32.totalorder %s285_s21, %s764_s3 }
  0xcd   : > { %p529_p13 = scmp.lt.s32.totalorder %s527_s6, %s523_s23 }
  0xce   : > { %p525_p7 = pnand %p524_p6, %p666_p9 }
  0xcf   : > { %p530_p11 = por %p529_p13, %p528_p4 }
  0xd0   : > { %p526_p10 = pneg %p525_p7 }
  0xd2   : > { %p531_p8 = pnand %p530_p11, %p526_p10 }
  0xd4   : > { %534 = shalt.err (!%p531_p8)
}
  0xd5   : > { %415 = dma.vmem_to_hbm [thread:$0]  (%p666_p9), %s288_s11, 128, %s285_s21, %s272_s28  }
  0xd6 PF: > { %s299_s24 = sand.u32 1, %s569_s12   ;;  %p770_p12 = scmp.ne.s32.totalorder %s768_s27, 0 }
  0xd7   : > { %p771_p0 = scmp.ge.s32.totalorder %s589_s17, 2  ;;  %s300_s9 = scalar_lea.sflag [#allocation4], %s299_s24 }
  0xd9   : > { %p422_p1 = pnand %p771_p0, %p770_p12 }
  0xdb   : > { %p423_p2 = pneg %p422_p1 }
  0xdd   : > { %564 = dma.done.wait (%p423_p2), %s300_s9, 128  }
  0xde   : > { %566 = vsyncadd (%p423_p2), %s300_s9, 4294967168  ;;  %s19_s17 = sadd.s32 1, %s589_s17   ;;  %s772_s12 = smov %s573_s13 }
  0xdf   : > { %p16_p3 = scmp.ge.s32.totalorder %s19_s17, 4   ;;  %s773_s13 = smov %s577_s14 }
  0xe0   : > { %s774_s14 = smov %s671_s26  ;;  %s775_s15 = smov %s585_s16 }
  0xe1   : > { %s776_s16 = smov %s778_s20  ;;  %18 = sbr.rel (!%p16_p3) target bundleno = 6 (0x6), region = 83 }
  0xe6   :  { %305 = vsyncpa [#allocation3], 1 }
  0xe7   :  { %307 = vsyncpa [#allocation3 + $0x1], 1 }
  0xe8   :  { %308 = vsyncpa [#allocation4], 1 }
  0xe9   :  { %310 = vsyncpa [#allocation4 + $0x1], 1 }

</bundles_post_ra>
